<compile_context>
chip_gen: v7x
topology: tpu7x:2x2x1
jax: 0.10.0
libtpu: 0.0.40
codegen_flags: <defaults>
</compile_context>

<pallas_src>
import functools
import math

import jax
import jax.numpy as jnp
from jax.experimental import pallas as pl
from jax.experimental.pallas import tpu as pltpu


def _sjlt_kernel(x_ref, idx_ref, sgn_ref, o_ref, *scratch, x_resident, out_is_acc):
    """Grid = (batch_tile, proj_tile, d_chunk); computes one (B_t, P_t) output tile."""
    j = pl.program_id(1)                       # projection-tile index
    k = pl.program_id(2)                       # original_dim chunk index (reduction)

    acc_ref = o_ref if out_is_acc else scratch[0]

    @pl.when(k == 0)
    def _init():
        acc_ref[...] = jnp.zeros_like(acc_ref)

    d_chunk, c = idx_ref.shape                 # tables are (Dc, c), lane axis = c
    proj_tile = o_ref.shape[1]
    slab_dtype = sgn_ref.dtype

    # Output-column lane iota (offset-free; j*proj_tile is folded into the
    # c-wide index columns below, saving a full (Dc, Pt) VALU pass).
    cols = jax.lax.broadcasted_iota(jnp.int32, (d_chunk, proj_tile), 1)
    zero = jnp.zeros((), slab_dtype)
    col_off = j * proj_tile

    # slab[d, p] = sum_kk sgn[d, kk] * [idx[d, kk] == p + j*proj_tile]
    # built directly in (K, N) orientation so the dot below needs no transpose.
    slab = None
    for kk in range(c):                        # c is a small static constant -> unrolled
        idx_col = idx_ref[:, kk:kk + 1] - col_off          # (Dc, 1) int32
        sgn_col = sgn_ref[:, kk:kk + 1]                    # (Dc, 1) slab dtype
        term = jnp.where(idx_col == cols, sgn_col, zero)   # compare + select
        slab = term if slab is None else slab + term
    if slab.dtype != jnp.bfloat16:
        slab = slab.astype(jnp.bfloat16)       # single cast pass (f32-build path only)

    if x_resident and x_ref.shape[1] != d_chunk:
        off = pl.multiple_of(k * d_chunk, d_chunk)
        x = x_ref[:, pl.ds(off, d_chunk)]      # (Bt, Dc) bf16 from resident row block
    else:
        x = x_ref[...]                         # (Bt, Dc) bf16, streamed per chunk

    acc_ref[...] += jax.lax.dot_general(
        x, slab,
        dimension_numbers=(((1,), (0,)), ((), ())),   # plain (M,K)@(K,N)
        preferred_element_type=jnp.float32)

    if not out_is_acc:
        @pl.when(k == pl.num_programs(2) - 1)
        def _finalize():
            o_ref[...] = acc_ref[...].astype(o_ref.dtype)


def _tpu_kind():
    try:
        return jax.devices()[0].device_kind.lower()
    except Exception:  # pragma: no cover
        return ""


def sjlt_projection(x, rand_indices, rand_signs, proj_dim, c, *,
                    b_tile=512, proj_tile=512, d_chunk=1024,
                    x_resident=None, slab_dtype=None):
    """Apply SJLT projection: x [B, D] -> [B, proj_dim]."""
    batch, original_dim = x.shape
    assert rand_indices.shape == (original_dim, c)
    assert rand_signs.shape == (original_dim, c)

    # Clamp tiles to the full extent for small problems; otherwise require clean
    # divisibility and (8, 128) alignment.  Perf notes: prefer b_tile a multiple
    # of 16 (bf16 sublane packing) and b_tile >= ~32*(3c+2) on v6e/v7x (half on
    # v5e) to keep the per-step slab rebuild MXU-bound; on v7x keep
    # (batch//b_tile)*(proj_dim//proj_tile) >= 2 so both TensorCores have work.
    b_tile = min(b_tile, batch)
    proj_tile = min(proj_tile, proj_dim)
    d_chunk = min(d_chunk, original_dim)
    if b_tile != batch:
        assert batch % b_tile == 0 and b_tile % 8 == 0
    if proj_tile != proj_dim:
        assert proj_dim % proj_tile == 0 and proj_tile % 128 == 0
    if d_chunk != original_dim:
        assert original_dim % d_chunk == 0 and d_chunk % 128 == 0

    kind = _tpu_kind()
    if slab_dtype is None:
        # v6e/v7x have bf16 VALU -> build the slab in bf16 (2x select/add
        # throughput, no cast pass); v5e (and unknown) build in f32, cast once.
        slab_dtype = jnp.bfloat16 if ("v6" in kind or "v7" in kind) else jnp.float32
    slab_dtype = jnp.dtype(slab_dtype)

    if x_resident is None:
        # Keep the whole (b_tile, D) bf16 row block resident (fetched from HBM
        # once per batch tile, not once per proj tile) while its double-buffered
        # footprint stays modest even on v7x's 64 MiB VMEM.
        x_resident = (2 * b_tile * original_dim * 2) <= (16 * 1024 * 1024)

    scale = 1.0 / math.sqrt(c)
    # Tables stay in the natural (D, c) orientation so the slab is built directly
    # in the MXU-native (K, N) layout; fold the 1/sqrt(c) scale into the signs.
    idx_dc = rand_indices.astype(jnp.int32)                               # (D, c)
    sgn_dc = (rand_signs.astype(jnp.float32) * scale).astype(slab_dtype)  # (D, c)
    x_bf16 = x.astype(jnp.bfloat16)

    out_dtype = x.dtype
    out_elem = jnp.dtype(out_dtype).itemsize
    out_is_acc = jnp.dtype(out_dtype) == jnp.dtype(jnp.float32)

    grid = (batch // b_tile, proj_dim // proj_tile, original_dim // d_chunk)

    if x_resident:
        x_spec = pl.BlockSpec((b_tile, original_dim), lambda b, j, k: (b, 0))
    else:
        x_spec = pl.BlockSpec((b_tile, d_chunk), lambda b, j, k: (b, k))

    # VMEM budget: double-buffered blocks + slab/mask/iota temporaries (+ f32
    # accumulator scratch for non-f32 outputs).  The narrow (Dc, c) table blocks
    # pad their lane axis to a full 128-lane tile in VMEM.
    x_block = b_tile * (original_dim if x_resident else d_chunk) * 2
    vmem_est = (2 * x_block
                + 2 * d_chunk * 128 * 4                      # idx blocks (int32)
                + 2 * d_chunk * 128 * slab_dtype.itemsize    # sgn blocks
                + 2 * b_tile * proj_tile * out_elem          # output blocks
                + (0 if out_is_acc else b_tile * proj_tile * 4)
                + 4 * d_chunk * proj_tile * 4)               # slab/mask/iota temps
    vmem_cap = (56 if "v7" in kind else 96) * 1024 * 1024    # headroom on v7x 64 MiB
    vmem_limit = int(min(vmem_cap, max(32 * 1024 * 1024, int(1.4 * vmem_est))))

    x_reads = 1 if x_resident else grid[1]
    cost = pl.CostEstimate(
        flops=2 * batch * original_dim * proj_dim,
        transcendentals=0,
        bytes_accessed=int(batch * original_dim * 2 * x_reads
                           + batch * proj_dim * out_elem
                           + (idx_dc.size * 4 + sgn_dc.size * slab_dtype.itemsize)
                           * grid[0] * grid[1]),
    )

    kernel = functools.partial(_sjlt_kernel,
                               x_resident=x_resident, out_is_acc=out_is_acc)

    return pl.pallas_call(
        kernel,
        out_shape=jax.ShapeDtypeStruct((batch, proj_dim), out_dtype),
        grid_spec=pltpu.PrefetchScalarGridSpec(
            num_scalar_prefetch=0,
            grid=grid,
            in_specs=[
                x_spec,
                pl.BlockSpec((d_chunk, c), lambda b, j, k: (k, 0)),
                pl.BlockSpec((d_chunk, c), lambda b, j, k: (k, 0)),
            ],
            out_specs=pl.BlockSpec((b_tile, proj_tile), lambda b, j, k: (b, j)),
            scratch_shapes=([] if out_is_acc
                            else [pltpu.VMEM((b_tile, proj_tile), jnp.float32)]),
        ),
        compiler_params=pltpu.CompilerParams(
            dimension_semantics=("parallel", "parallel", "arbitrary"),
            vmem_limit_bytes=vmem_limit,
        ),
        cost_estimate=cost,
    )(x_bf16, idx_dc, sgn_dc)


def sjlt_reference(x, rand_indices, rand_signs, proj_dim, c):
    """Pure-JAX f32 scatter-add reference (mirrors the CUDA atomicAdd kernel)."""
    scale = 1.0 / math.sqrt(c)
    xf = x.astype(jnp.float32)
    out = jnp.zeros((x.shape[0], proj_dim), jnp.float32)
    for k in range(c):
        contrib = xf * rand_signs[:, k].astype(jnp.float32)[None, :]
        out = out.at[:, rand_indices[:, k]].add(contrib)
    return out * scale


def sjlt_reference_bf16(x, rand_indices, rand_signs, proj_dim, c):
    """Scatter-add reference with the kernel's bf16 input/weight quantization (f32 accumulation)."""
    scale = jnp.float32(1.0 / math.sqrt(c))
    xq = x.astype(jnp.bfloat16).astype(jnp.float32)
    w = (rand_signs.astype(jnp.float32) * scale).astype(jnp.bfloat16).astype(jnp.float32)
    out = jnp.zeros((x.shape[0], proj_dim), jnp.float32)
    for k in range(c):
        out = out.at[:, rand_indices[:, k]].add(xq * w[:, k][None, :])
    return out


if __name__ == "__main__":
    # Small shapes consistent with the module's forward: x is [batch, original_dim].
    batch = 16
    original_dim = 256
    proj_dim = 512
    c = 2

    key = jax.random.PRNGKey(0)
    k_x, k_idx, k_sgn = jax.random.split(key, 3)

    x = jax.random.normal(k_x, (batch, original_dim), dtype=jnp.float32)
    # Deterministic "buffers" matching torch.randint semantics/shapes.
    rand_indices = jax.random.randint(k_idx, (original_dim, c), 0, proj_dim, dtype=jnp.int32)
    rand_signs = (jax.random.randint(k_sgn, (original_dim, c), 0, 2, dtype=jnp.int32) * 2 - 1).astype(jnp.int8)

    ref_q = sjlt_reference_bf16(x, rand_indices, rand_signs, proj_dim, c)
    ref_f = sjlt_reference(x, rand_indices, rand_signs, proj_dim, c)

    # 1) Small tiles so every grid axis has >1 step; exercises the resident-x
    #    (fetch-once, in-kernel pl.ds slice) path and, for f32 output, the
    #    accumulate-directly-into-o_ref path.
    out1 = sjlt_projection(x, rand_indices, rand_signs, proj_dim, c,
                           b_tile=8, proj_tile=256, d_chunk=128)
    out1 = jax.block_until_ready(out1)
    assert out1.shape == (batch, proj_dim)
    assert jnp.allclose(out1.astype(jnp.float32), ref_q, atol=1e-3, rtol=1e-3), \
        "resident-x path: mismatch vs bf16-quantized reference"
    assert jnp.allclose(out1.astype(jnp.float32), ref_f, atol=5e-2, rtol=5e-2), \
        "resident-x path: mismatch vs f32 reference"

    # 2) Streamed-x path + f32 slab build (the v5e path) + non-f32 output
    #    (bf16 -> uses the f32 scratch accumulator and a final cast).
    out2 = sjlt_projection(x.astype(jnp.bfloat16), rand_indices, rand_signs, proj_dim, c,
                           b_tile=8, proj_tile=256, d_chunk=128,
                           x_resident=False, slab_dtype=jnp.float32)
    out2 = jax.block_until_ready(out2)
    assert out2.dtype == jnp.bfloat16 and out2.shape == (batch, proj_dim)
    assert jnp.allclose(out2.astype(jnp.float32), ref_q, atol=1e-2, rtol=2e-2), \
        "streamed-x path: mismatch vs bf16-quantized reference"

    # 3) Default (large) tiles, which clamp to the full extents at this size.
    out3 = sjlt_projection(x, rand_indices, rand_signs, proj_dim, c)
    out3 = jax.block_until_ready(out3)
    assert out3.shape == (batch, proj_dim)
    assert jnp.allclose(out3.astype(jnp.float32), ref_q, atol=1e-3, rtol=1e-3), \
        "default-tile path: mismatch vs bf16-quantized reference"

    print("KERNEL_OK")
</pallas_src>

<mosaic_0001>
module attributes {stable_mosaic.version = 11 : i64} {
  func.func @_sjlt_kernel(%arg0: i32, %arg1: i32, %arg2: i32, %arg3: memref<8x256xbf16, #tpu.memory_space<vmem>>, %arg4: memref<128x2xi32, #tpu.memory_space<vmem>>, %arg5: memref<128x2xf32, #tpu.memory_space<vmem>>, %arg6: memref<8x256xf32, #tpu.memory_space<vmem>>) attributes {dimension_semantics = [#tpu.dimension_semantics<parallel>, #tpu.dimension_semantics<parallel>, #tpu.dimension_semantics<arbitrary>], iteration_bounds = array<i64: 2, 2, 2>, scalar_prefetch = 0 : i64, scratch_operands = 0 : i64, tpu.core_type = #tpu.core_type<tc>, window_params = [{transform_indices = @transform_0, window_bounds = array<i64: 8, 256>}, {transform_indices = @transform_1, window_bounds = array<i64: 128, 2>}, {transform_indices = @transform_2, window_bounds = array<i64: 128, 2>}, {transform_indices = @transform_3, window_bounds = array<i64: 8, 256>}]} {
    %c0_i32 = arith.constant 0 : i32
    %0 = arith.cmpi eq, %arg2, %c0_i32 : i32
    %1 = arith.extui %0 : i1 to i32
    %c0_i32_0 = arith.constant 0 : i32
    %2 = arith.cmpi ne, %1, %c0_i32_0 : i32
    scf.if %2 {
      %cst_14 = arith.constant 0.000000e+00 : f32
      %35 = vector.broadcast %cst_14 : f32 to vector<8x256xf32>
      %c0_15 = arith.constant 0 : index
      %c0_16 = arith.constant 0 : index
      %36 = vector.load %arg6[%c0_15, %c0_16] : memref<8x256xf32, #tpu.memory_space<vmem>>, vector<8x256xf32>
      tpu.vector_store %arg6[%c0_15, %c0_16], %35 {strides = array<i32>} : memref<8x256xf32, #tpu.memory_space<vmem>>, vector<8x256xf32>,
    } else {
    }
    %3 = tpu.iota {dimensions = array<i32: 1>} : vector<128x256xi32>
    %c256_i32 = arith.constant 256 : i32
    %4 = arith.muli %arg1, %c256_i32 : i32
    %c0 = arith.constant 0 : index
    %c0_1 = arith.constant 0 : index
    %5 = vector.load %arg4[%c0, %c0_1] : memref<128x2xi32, #tpu.memory_space<vmem>>, vector<128x1xi32>
    %6 = vector.broadcast %4 : i32 to vector<128x1xi32>
    %7 = arith.subi %5, %6 : vector<128x1xi32>
    %c0_2 = arith.constant 0 : index
    %c0_3 = arith.constant 0 : index
    %8 = vector.load %arg5[%c0_2, %c0_3] : memref<128x2xf32, #tpu.memory_space<vmem>>, vector<128x1xf32>
    %9 = vector.broadcast %7 : vector<128x1xi32> to vector<128x256xi32>
    %10 = arith.cmpi eq, %9, %3 : vector<128x256xi32>
    %cst = arith.constant 0.000000e+00 : f32
    %11 = vector.shape_cast %8 : vector<128x1xf32> to vector<128x1xf32>
    %12 = vector.broadcast %11 : vector<128x1xf32> to vector<128x256xf32>
    %13 = vector.broadcast %cst : f32 to vector<128x256xf32>
    %14 = arith.select %10, %12, %13 : vector<128x256xi1>, vector<128x256xf32>
    %c0_4 = arith.constant 0 : index
    %c1 = arith.constant 1 : index
    %15 = vector.load %arg4[%c0_4, %c1] : memref<128x2xi32, #tpu.memory_space<vmem>>, vector<128x1xi32>
    %16 = vector.broadcast %4 : i32 to vector<128x1xi32>
    %17 = arith.subi %15, %16 : vector<128x1xi32>
    %c0_5 = arith.constant 0 : index
    %c1_6 = arith.constant 1 : index
    %18 = vector.load %arg5[%c0_5, %c1_6] : memref<128x2xf32, #tpu.memory_space<vmem>>, vector<128x1xf32>
    %19 = vector.broadcast %17 : vector<128x1xi32> to vector<128x256xi32>
    %20 = arith.cmpi eq, %19, %3 : vector<128x256xi32>
    %cst_7 = arith.constant 0.000000e+00 : f32
    %21 = vector.shape_cast %18 : vector<128x1xf32> to vector<128x1xf32>
    %22 = vector.broadcast %21 : vector<128x1xf32> to vector<128x256xf32>
    %23 = vector.broadcast %cst_7 : f32 to vector<128x256xf32>
    %24 = arith.select %20, %22, %23 : vector<128x256xi1>, vector<128x256xf32>
    %25 = arith.addf %14, %24 : vector<128x256xf32>
    %26 = arith.truncf %25 : vector<128x256xf32> to vector<128x256xbf16>
    %c128_i32 = arith.constant 128 : i32
    %27 = arith.muli %arg2, %c128_i32 : i32
    %28 = tpu.assume_multiple %27, 128 : i32
    %c0_8 = arith.constant 0 : index
    %29 = arith.index_cast %28 : i32 to index
    %30 = vector.load %arg3[%c0_8, %29] : memref<8x256xbf16, #tpu.memory_space<vmem>>, vector<8x128xbf16>
    %c0_9 = arith.constant 0 : index
    %c0_10 = arith.constant 0 : index
    %31 = vector.load %arg6[%c0_9, %c0_10] : memref<8x256xf32, #tpu.memory_space<vmem>>, vector<8x256xf32>
    %cst_11 = arith.constant dense<0.000000e+00> : vector<8x256xf32>
    %32 = tpu.matmul %30, %26, %cst_11 {dimension_numbers = #tpu.dot_dimension_numbers<[1], [0], [0], [1], [0, 0, 1, 1], [], []>} : vector<8x128xbf16>, vector<128x256xbf16>, vector<8x256xf32> -> vector<8x256xf32>
    %33 = arith.addf %31, %32 : vector<8x256xf32>
    %c0_12 = arith.constant 0 : index
    %c0_13 = arith.constant 0 : index
    %34 = vector.load %arg6[%c0_12, %c0_13] : memref<8x256xf32, #tpu.memory_space<vmem>>, vector<8x256xf32>
    tpu.vector_store %arg6[%c0_12, %c0_13], %33 {strides = array<i32>} : memref<8x256xf32, #tpu.memory_space<vmem>>, vector<8x256xf32>,
    return
  }
  func.func @transform_0(%arg0: i32, %arg1: i32, %arg2: i32) -> (i32, i32) {
    %c0_i32 = arith.constant 0 : i32
    %c0_i32_0 = arith.constant 0 : i32
    return %arg0, %c0_i32 : i32, i32
  }
  func.func @transform_1(%arg0: i32, %arg1: i32, %arg2: i32) -> (i32, i32) {
    %c0_i32 = arith.constant 0 : i32
    %c0_i32_0 = arith.constant 0 : i32
    return %arg2, %c0_i32 : i32, i32
  }
  func.func @transform_2(%arg0: i32, %arg1: i32, %arg2: i32) -> (i32, i32) {
    %c0_i32 = arith.constant 0 : i32
    %c0_i32_0 = arith.constant 0 : i32
    return %arg2, %c0_i32 : i32, i32
  }
  func.func @transform_3(%arg0: i32, %arg1: i32, %arg2: i32) -> (i32, i32) {
    %c0_i32 = arith.constant 0 : i32
    return %arg0, %arg1 : i32, i32
  }
}

</mosaic_0001>

<bundles_post_ra>
// kernel: tpu_custom_call.1
= control target key start
LH: loop header
LB: loop body
LE: loop exit
PB: predicated region body
PF: predicated region fallthrough
CT: control target
= control target key end

     0   :  { %8 = vsyncpa [#allocation3], 0  ;;  %s1656_s0 = inlined_call_operand.vmem [shape: bf16[16,256], index: 0, kind: input, shape index: {}]   ;;  %s1657_s1 = inlined_call_operand.vmem [shape: s32[256,2], index: 1, kind: input, shape index: {}]   ;;  %s1658_s2 = inlined_call_operand.vmem [shape: f32[256,2], index: 2, kind: input, shape index: {}]   ;;  %s1659_s3 = inlined_call_operand.hbm [shape: f32[16,512], index: 3, kind: output, shape index: {}]  }
   0x1   :  { %10 = vsyncpa [#allocation3 + $0x1], 0  ;;  %s1168_s12 = smov 0   ;;  %s1170_s13 = smov 0  }
   0x2   :  { %s1172_s14 = smov 0   ;;  %s1174_s15 = smov 0  }
   0x3   :  { %s1176_s16 = smov 0   ;;  %s1178_s17 = smov 0  }
   0x4   :  { %s1180_s18 = smov 0   ;;  %s1182_s19 = smov 0  }
   0x5   :  { %s1184_s20 = smov 0   ;;  %s1186_s21 = smov 0  }
   0x6 LB: > { %1664 = sst [smem:[#allocation5_spill]] %s1138_s20  ;;  %s886_s22 = sadd.s32 4294967295, %s1142_s21   ;;  %s1142_s21 = sphi %s1186_s21, %s16_s21   ;;  %s1138_s20 = sphi %s1184_s20, %s1674_s20   ;;  %s1134_s19 = sphi %s1182_s19, %s1681_s19   ;;  %s1130_s18 = sphi %s1180_s18, %s1680_s18   ;;  %s1126_s17 = sphi %s1178_s17, %s1671_s17   ;;  %s1122_s16 = sphi %s1176_s16, %s1679_s16   ;;  %s1118_s15 = sphi %s1174_s15, %s1678_s15   ;;  %s1114_s14 = sphi %s1172_s14, %s1677_s14   ;;  %s1110_s13 = sphi %s1170_s13, %s1676_s13   ;;  %s1106_s12 = sphi %s1168_s12, %s1675_s12  }
   0x7   : > { %s887_s23 = sadd.s32 4294967294, %s1142_s21   ;;  %s28_s24 = sadd.s32 1, %s1130_s18 }
   0x8   : > { %p29_p0 = scmp.ge.s32.totalorder %s28_s24, 2  ;;  %s31_s25 = sadd.s32 1, %s1134_s19 }
   0x9   : > { %s35_s26 = sadd.s32 1, %s1138_s20  ;;  %p132_p1 = scmp.ne.s32.totalorder %s1114_s14, %s1110_s13 }
   0xa   : > { %s1683_s24 = smov (%p29_p0, %s28_s24), 0  ;;  %s1685_s25 = smov (!%p29_p0, %s31_s25), %s1134_s19 }
   0xb   : > { %1665 = sst [smem:[#allocation6_spill]] %s1683_s24  ;;  %p133_p2 = scmp.eq.s32.totalorder %s886_s22, 7 }
   0xc   : > { %p138_p3 = scmp.ne.s32.totalorder %s1110_s13, %s1106_s12  ;;  %p33_p4 = scmp.ge.s32.totalorder %s1685_s25, 2 }
   0xd   : > { %p139_p5 = scmp.eq.s32.totalorder %s887_s23, 7  ;;  %p1230_p6 = por %p133_p2, %p132_p1 }
   0xe   : > { %s1687_s25 = smov (%p33_p4, %s1685_s25), 0  ;;  %s1689_s26 = smov (!%p33_p4, %s35_s26), %s1138_s20 }
   0xf   : > { %1667 = sst [smem:[#allocation7_spill]] %s1687_s25  ;;  %p1237_p7 = por %p139_p5, %p138_p3 }
  0x10   : > { %p890_p8 = scmp.ge.s32.totalorder %s1142_s21, 1  ;;  %p37_p9 = scmp.ge.s32.totalorder %s1689_s26, 2 }
  0x11   : > { %p183_p10 = scmp.lt.s32.totalorder %s1142_s21, 9  ;;  %s118_s29 = ssub.s32 %s1134_s19, %s1687_s25 }
  0x12   : > { %s1691_s26 = smov (%p37_p9, %s1689_s26), 0  ;;  %s122_s5 = sadd.s32 1, %s1114_s14 }
  0x13   : > { %1669 = sst [smem:[#allocation8_spill]] %s1691_s26  ;;  %p184_p11 = pnand %p890_p8, %p183_p10 }
  0x14   : > { %s117_s30 = ssub.s32 %s1138_s20, %s1691_s26  ;;  %s1662_s7 = sand.u32 (!%p184_p11), 1, %s1110_s13  }
  0x15   : > { %s119_s4 = sor.u32 %s118_s29, %s117_s30  ;;  %187 = sbr.rel (%p184_p11) target bundleno = 588 (0x24c), region = 32 }
  0x16   : > { %p120_p12 = scmp.eq.s32.totalorder %s119_s4, 0  ;;  %p217_p13 = scmp.lt.s32.totalorder (!%p184_p11), %s1126_s17, 1 }
  0x17   : > { %s891_s8 = sshll.u32 (!%p184_p11), %s1662_s7, 4  ;;  %s894_s9 = sshll.u32 (!%p184_p11), %s1118_s15, 4 }
  0x18   : > { %s1251_s6 = scalar_select %p120_p12, %s1114_s14, %s122_s5  }
  0x19   : > { %p223_p0 = scmp.lt.s32.totalorder (!%p184_p11), %s894_s9, 31  ;;  %s1274_s20 = scalar_lea.vmem (!%p184_p11), [#allocation2], %s891_s8 }
  0x1a   : > { %p898_p1 = scmp.ne.s32.totalorder (!%p184_p11), %s1118_s15, 0 }
  0x1c   : > { %s218_s10 = scalar_select %p217_p13, %s1126_s17, 1 }
  0x1d   : > { %s1693_s9 = smov (!%p223_p0, %s894_s9), 31  ;;  %239 = sbr.rel (%p898_p1) target bundleno = 36 (0x24), region = 36 }
  0x1e   : > { %s908_s11 = sshll.u32 %s218_s10, 3  ;;  %s895_s30 = sshll.u32 %s1693_s9, 3  ;;  %v1144_v0 = vmov (!%p898_p1), 0.0  }
  0x1f   : > { %s1262_s29 = scalar_lea.vmem %s1656_s0, %s908_s11  ;;  %s1267_s26 = scalar_lea.vmem %s1657_s1, %s895_s30  ;;  %240 = vst [vmem:[%s1274_s20] sm:$0xff] (!%p898_p1), %v1144_v0  ;;  %241 = vst [vmem:[%s1274_s20 + $0x8] sm:$0xff] (!%p898_p1), %v1144_v0 }
  0x20   : > { %s1272_s7 = scalar_lea.vmem %s1658_s2, %s895_s30 }
  0x24 PF: > { %s899_s9 = sshll.u32 %s1122_s16, 8  ;;  %v246_v1 = vld [vmem:[%s1267_s26] sm:$0xff]  ;;  %v1145_v2 = vmov 1   ;;  %v1146_v3 = vmov 0   ;;  %v247_v5 = vld [vmem:[%s1267_s26 + $0x8] sm:$0xff]  ;;  %v249_v9 = vld [vmem:[%s1267_s26 + $0x18] sm:$0xff] }
  0x25   : > { %1000 = vset.pattern.permute.xlu1 %v1145_v2  ;;  %999 = vset.pattern.permute.xlu0 %v1146_v3  ;;  %v1283_v4 = vstv %s899_s9  ;;  %v1290_v8 = vld [vmem:[%s1272_s7] sm:$0xff]  ;;  %v280_v10 = vld [vmem:[%s1272_s7 + $0x8] sm:$0xff]  ;;  %v248_v12 = vld [vmem:[%s1267_s26 + $0x10] sm:$0xff]  ;;  %s900_s24 = sshll.u32 %s1118_s15, 7  ;;  %s904_s8 = sshll.u32 %s1126_s17, 2 }
  0x26   : > { %v263_v6 = vsub.s32 %v246_v1, %v1283_v4  ;;  %751 = vmatprep.mubr.bf16.mxu0 %v1146_v3  ;;  %v264_v7 = vsub.s32 %v247_v5, %v1283_v4  ;;  %v266_v11 = vsub.s32 %v249_v9, %v1283_v4  ;;  %v1300_v13 = vld [vmem:[%s1272_s7 + $0x10] sm:$0xff]  ;;  %v251_v14 = vld [vmem:[%s1267_s26 + $0x28] sm:$0xff]  ;;  %v265_v15 = vsub.s32 %v248_v12, %v1283_v4  ;;  %v283_v17 = vld [vmem:[%s1272_s7 + $0x20] sm:$0xff]  ;;  %s712_s25 = sshra.s32 %s900_s24, 7  ;;  %s781_s22 = sshll.u32 %s1274_s20, 4  ;;  %s1595_s22 = int_to_ptr.vmem [resolvable:$true] %s781_s22 }
  0x27   : > { %v268_v16 = vsub.s32 %v251_v14, %v1283_v4  ;;  %v253_v18 = vld [vmem:[%s1267_s26 + $0x38] sm:$0xff]  ;;  %v285_v20 = vld [vmem:[%s1272_s7 + $0x30] sm:$0xff]  ;;  %v255_v21 = vld [vmem:[%s1267_s26 + $0x48] sm:$0xff]  ;;  %s901_s15 = sshll.u32 %s712_s25, 2  ;;  %s1032_s4 = scalar_lea.vmem %s1595_s22, 256 }
  0x28   : > { %488 = vperm.xlu1 %1000, %v263_v6   ;;  %296 = vperm.xlu0 %999, %v263_v6   ;;  %v270_v19 = vsub.s32 %v253_v18, %v1283_v4  ;;  %v282_v22 = vld [vmem:[%s1272_s7 + $0x18] sm:$0xff]  ;;  %v272_v23 = vsub.s32 %v255_v21, %v1283_v4  ;;  %v250_v24 = vld [vmem:[%s1267_s26 + $0x20] sm:$0xff]  ;;  %v289_v29 = vld [vmem:[%s1272_s7 + $0x50] sm:$0xff]  ;;  %p1033_p2 = scmp.ne.s32.totalorder %s1595_s22, %s1032_s4  ;;  %s1147_s5 = smov [#allocation2]  }
  0x29   : > { %v287_v25 = vld [vmem:[%s1272_s7 + $0x40] sm:$0xff]  ;;  %v257_v26 = vld [vmem:[%s1267_s26 + $0x58] sm:$0xff]  ;;  %v267_v27 = vsub.s32 %v250_v24, %v1283_v4  ;;  %v259_v30 = vld [vmem:[%s1267_s26 + $0x68] sm:$0xff]  ;;  %s1036_s9 = sshll.u32 %s1147_s5, 4  ;;  %s1037_s9 = int_to_ptr.vmem [resolvable:$false] %s1036_s9 }
  0x2a   : > { %v274_v28 = vsub.s32 %v257_v26, %v1283_v4  ;;  %v1327_v31 = vsub.s32 %v259_v30, %v1283_v4  ;;  %v291_v32 = vld [vmem:[%s1272_s7 + $0x60] sm:$0xff]  ;;  %v261_v33 = vld [vmem:[%s1267_s26 + $0x78] sm:$0xff]  ;;  %v284_v34 = vld [vmem:[%s1272_s7 + $0x28] sm:$0xff]  ;;  %p1034_p3 = pnand %p1033_p2, %p1230_p6  ;;  %s1038_s24 = scalar_lea.vmem %s1037_s9, 512 }
  0x2b   : > { %v1335_v35 = vsub.s32 %v261_v33, %v1283_v4  ;;  %v252_v36 = vld [vmem:[%s1267_s26 + $0x30] sm:$0xff]  ;;  %v286_v39 = vld [vmem:[%s1272_s7 + $0x38] sm:$0xff]  ;;  %v254_v40 = vld [vmem:[%s1267_s26 + $0x40] sm:$0xff]  ;;  %p1039_p5 = scmp.lt.s32.totalorder %s1595_s22, %s1037_s9  ;;  %p1040_p8 = scmp.lt.s32.totalorder %s1038_s24, %s1032_s4 }
  0x2c   : > { %491 = vperm.xlu1 %1000, %v264_v7   ;;  %299 = vperm.xlu0 %999, %v264_v7   ;;  %v293_v37 = vld [vmem:[%s1272_s7 + $0x70] sm:$0xff]  ;;  %v269_v38 = vsub.s32 %v252_v36, %v1283_v4  ;;  %v271_v41 = vsub.s32 %v254_v40, %v1283_v4  ;;  %v288_v42 = vld [vmem:[%s1272_s7 + $0x48] sm:$0xff]  ;;  %v290_v45 = vld [vmem:[%s1272_s7 + $0x58] sm:$0xff]  ;;  %p1035_p4 = pneg %p1034_p3 }
  0x2d   : > { %v256_v43 = vld [vmem:[%s1267_s26 + $0x50] sm:$0xff]  ;;  %v258_v50 = vld [vmem:[%s1267_s26 + $0x60] sm:$0xff]  ;;  %v292_v59 = vld [vmem:[%s1272_s7 + $0x68] sm:$0xff]  ;;  %p1041_p9 = por %p1040_p8, %p1039_p5 }
  0x2e   : > { %v273_v44 = vsub.s32 %v256_v43, %v1283_v4  ;;  %v275_v52 = vsub.s32 %v258_v50, %v1283_v4  ;;  %v260_v0 = vld [vmem:[%s1267_s26 + $0x70] sm:$0xff]  ;;  %s715_s26 = scalar_lea.vmem %s1262_s29, %s901_s15 }
  0x2f   : > { %v277_v5 = vsub.s32 %v260_v0, %v1283_v4  ;;  %v294_v4 = vld [vmem:[%s1272_s7 + $0x78] sm:$0xff]  ;;  %s903_s7 = sshll.u32 %s1122_s16, 1  ;;  %s1670_s16 = sand.u32 1, %s1110_s13  }
  0x30   : > { %1001 = vset.pattern.permute.xlu1 %v1146_v3  ;;  %377 = vperm.xlu0 %999, %v1290_v8   ;;  %s777_s10 = sadd.s32 %s904_s8, %s903_s7  ;;  %s765_s17 = scalar_lea.sflag [#allocation3], %s1670_s16 }
  0x31   : > { %382 = vperm.xlu1 %1001, %v280_v10   ;;  %s905_s11 = sshll.u32 %s777_s10, 7  ;;  %p1042_p10 = pnand %p1041_p9, %p1035_p4 }
  0x32   : > { %s1593_s30 = scalar_lea.hbm %s1659_s3, %s905_s11 }
  0x34   : > { %305 = vperm.xlu0 %999, %v266_v11  }
  0x35   : > { %1002 = vset.pattern.permute.xlu1 %v1145_v2 }
  0x36   : > { %572 = vperm.xlu1 %1002, %v280_v10  }
  0x38   : > { %387 = vperm.xlu0 %999, %v1300_v13  }
  0x3a   : > { %1003 = vset.pattern.permute.xlu1 %v1146_v3 }
  0x3b   : > { %302 = vperm.xlu1 %1003, %v265_v15  }
  0x3c   : > { %311 = vperm.xlu0 %999, %v268_v16  }
  0x3f   : > { %1004 = vset.pattern.permute.xlu1 %v1145_v2 }
  0x40   : > { %494 = vperm.xlu1 %1004, %v265_v15   ;;  %397 = vperm.xlu0 %999, %v283_v17  }
  0x44   : > { %497 = vperm.xlu1 %1004, %v266_v11   ;;  %317 = vperm.xlu0 %999, %v270_v19  }
  0x48   : > { %1005 = vset.pattern.permute.xlu1 %v1146_v3  ;;  %407 = vperm.xlu0 %999, %v285_v20  }
  0x49   : > { %392 = vperm.xlu1 %1005, %v282_v22  }
  0x4c   : > { %323 = vperm.xlu0 %999, %v272_v23  }
  0x4d   : > { %1006 = vset.pattern.permute.xlu1 %v1145_v2 }
  0x4e   : > { %580 = vperm.xlu1 %1006, %v282_v22  }
  0x50   : > { %417 = vperm.xlu0 %999, %v287_v25  }
  0x52   : > { %1007 = vset.pattern.permute.xlu1 %v1146_v3 }
  0x53   : > { %308 = vperm.xlu1 %1007, %v267_v27  }
  0x54   : > { %329 = vperm.xlu0 %999, %v274_v28  }
  0x57   : > { %1008 = vset.pattern.permute.xlu1 %v1145_v2 }
  0x58   : > { %500 = vperm.xlu1 %1008, %v267_v27   ;;  %427 = vperm.xlu0 %999, %v289_v29  }
  0x5c   : > { %503 = vperm.xlu1 %1008, %v268_v16   ;;  %335 = vperm.xlu0 %999, %v1327_v31   ;;  %v242_v16 = vlaneseq }
  0x5e   : > { %v1430_v18 = vand.u32 127, %v242_v16 }
  0x60   : > { %1009 = vset.pattern.permute.xlu1 %v1146_v3  ;;  %437 = vperm.xlu0 %999, %v291_v32   ;;  %v1437_v21 = vadd.s32 128, %v1430_v18 }
  0x61   : > { %402 = vperm.xlu1 %1009, %v284_v34  }
  0x64   : > { %341 = vperm.xlu0 %999, %v1335_v35  }
  0x65   : > { %1010 = vset.pattern.permute.xlu1 %v1145_v2 }
  0x66   : > { %588 = vperm.xlu1 %1010, %v284_v34  }
  0x68   : > { %447 = vperm.xlu0 %999, %v293_v37  }
  0x6a   : > { %1011 = vset.pattern.permute.xlu1 %v1146_v3 }
  0x6b   : > { %314 = vperm.xlu1 %1011, %v269_v38  }
  0x6c   : > { %1029 = vset.pattern.permute.xlu0 %v1145_v2 }
  0x6d   : > { %568 = vperm.xlu0 %1029, %v1290_v8  }
  0x6f   : > { %1012 = vset.pattern.permute.xlu1 %v1145_v2 }
  0x70   : > { %506 = vperm.xlu1 %1012, %v269_v38  }
  0x71   : > { %576 = vperm.xlu0 %1029, %v1300_v13  }
  0x74   : > { %509 = vperm.xlu1 %1012, %v270_v19  }
  0x75   : > { %584 = vperm.xlu0 %1029, %v283_v17  }
  0x78   : > { %1013 = vset.pattern.permute.xlu1 %v1146_v3 }
  0x79   : > { %412 = vperm.xlu1 %1013, %v286_v39   ;;  %592 = vperm.xlu0 %1029, %v285_v20  }
  0x7d   : > { %1014 = vset.pattern.permute.xlu1 %v1145_v2  ;;  %600 = vperm.xlu0 %1029, %v287_v25  }
  0x7e   : > { %596 = vperm.xlu1 %1014, %v286_v39  }
  0x81   : > { %608 = vperm.xlu0 %1029, %v289_v29  }
  0x82   : > { %1015 = vset.pattern.permute.xlu1 %v1146_v3 }
  0x83   : > { %320 = vperm.xlu1 %1015, %v271_v41  }
  0x85   : > { %616 = vperm.xlu0 %1029, %v291_v32  }
  0x87   : > { %1016 = vset.pattern.permute.xlu1 %v1145_v2 }
  0x88   : > { %512 = vperm.xlu1 %1016, %v271_v41  }
  0x89   : > { %624 = vperm.xlu0 %1029, %v293_v37  }
  0x8c   : > { %515 = vperm.xlu1 %1016, %v272_v23  }
  0x90   : > { %1017 = vset.pattern.permute.xlu1 %v1146_v3 }
  0x91   : > { %422 = vperm.xlu1 %1017, %v288_v42  }
  0x95   : > { %1018 = vset.pattern.permute.xlu1 %v1145_v2 }
  0x96   : > { %604 = vperm.xlu1 %1018, %v288_v42  }
  0x9a   : > { %1019 = vset.pattern.permute.xlu1 %v1146_v3 }
  0x9b   : > { %326 = vperm.xlu1 %1019, %v273_v44  }
  0x9f   : > { %1020 = vset.pattern.permute.xlu1 %v1145_v2 }
  0xa0   : > { %518 = vperm.xlu1 %1020, %v273_v44  }
  0xa4   : > { %521 = vperm.xlu1 %1020, %v274_v28  }
  0xa7   : > { %v1362_v46 = vpop.permute.xlu1 %488  ;;  %v1364_v47 = vpop.permute.xlu0 %296 }
  0xa8   : > { %1021 = vset.pattern.permute.xlu1 %v1146_v3  ;;  %vm343_vm0 = vcmp.eq.s32.totalorder %v1364_v47, %v1430_v18  ;;  %vm344_vm1 = vcmp.eq.s32.totalorder %v1364_v47, %v1437_v21  ;;  %vm535_vm6 = vcmp.eq.s32.totalorder %v1362_v46, %v1430_v18  ;;  %vm536_vm7 = vcmp.eq.s32.totalorder %v1362_v46, %v1437_v21 }
  0xa9   : > { %432 = vperm.xlu1 %1021, %v290_v45  }
  0xab   : > { %v1367_v48 = vpop.permute.xlu1 %491  ;;  %v1369_v49 = vpop.permute.xlu0 %299 }
  0xac   : > { %vm537_vm2 = vcmp.eq.s32.totalorder %v1367_v48, %v1430_v18  ;;  %vm538_vm3 = vcmp.eq.s32.totalorder %v1367_v48, %v1437_v21  ;;  %vm345_vm4 = vcmp.eq.s32.totalorder %v1369_v49, %v1430_v18  ;;  %vm346_vm5 = vcmp.eq.s32.totalorder %v1369_v49, %v1437_v21 }
  0xad   : > { %1022 = vset.pattern.permute.xlu1 %v1145_v2 }
  0xae   : > { %612 = vperm.xlu1 %1022, %v290_v45  }
  0xaf   : > { %v1373_v51 = vpop.permute.xlu0 %377 }
  0xb0   : > { %v1376_v53 = vpop.permute.xlu1 %382  ;;  %v455_v26 = vsel %vm343_vm0, %v1373_v51, 0.0  ;;  %v456_v27 = vsel %vm344_vm1, %v1373_v51, 0.0 }
  0xb1   : > { %v457_v24 = vsel %vm345_vm4, %v1376_v53, 0.0  ;;  %v458_v25 = vsel %vm346_vm5, %v1376_v53, 0.0 }
  0xb2   : > { %1023 = vset.pattern.permute.xlu1 %v1146_v3 }
  0xb3   : > { %332 = vperm.xlu1 %1023, %v275_v52   ;;  %v1379_v54 = vpop.permute.xlu0 %305 }
  0xb4   : > { %vm349_vm10 = vcmp.eq.s32.totalorder %v1379_v54, %v1430_v18  ;;  %vm350_vm11 = vcmp.eq.s32.totalorder %v1379_v54, %v1437_v21 }
  0xb5   : > { %v573_v55 = vpop.permute.xlu1 %572 }
  0xb6   : > { %v633_v22 = vsel %vm537_vm2, %v573_v55, 0.0  ;;  %v634_v23 = vsel %vm538_vm3, %v573_v55, 0.0 }
  0xb7   : > { %1024 = vset.pattern.permute.xlu1 %v1145_v2  ;;  %v1382_v56 = vpop.permute.xlu0 %387  ;;  %v665_v29 = vadd.f32 %v633_v22, %v457_v24  ;;  %v666_v30 = vadd.f32 %v634_v23, %v458_v25 }
  0xb8   : > { %524 = vperm.xlu1 %1024, %v275_v52  }
  0xba   : > { %v1384_v57 = vpop.permute.xlu1 %302 }
  0xbb   : > { %v1386_v58 = vpop.permute.xlu0 %311  ;;  %vm347_vm8 = vcmp.eq.s32.totalorder %v1384_v57, %v1430_v18  ;;  %vm348_vm9 = vcmp.eq.s32.totalorder %v1384_v57, %v1437_v21 }
  0xbc   : > { %527 = vperm.xlu1 %1024, %v1327_v31   ;;  %v459_v31 = vsel %vm347_vm8, %v1382_v56, 0.0  ;;  %v460_v32 = vsel %vm348_vm9, %v1382_v56, 0.0  ;;  %vm353_vm12 = vcmp.eq.s32.totalorder %v1386_v58, %v1430_v18  ;;  %vm354_vm13 = vcmp.eq.s32.totalorder %v1386_v58, %v1437_v21 }
  0xbf   : > { %v1390_v60 = vpop.permute.xlu1 %494  ;;  %v1392_v61 = vpop.permute.xlu0 %397 }
  0xc0   : > { %1025 = vset.pattern.permute.xlu1 %v1146_v3  ;;  %vm539_vm0 = vcmp.eq.s32.totalorder %v1390_v60, %v1430_v18  ;;  %vm540_vm1 = vcmp.eq.s32.totalorder %v1390_v60, %v1437_v21 }
  0xc1   : > { %442 = vperm.xlu1 %1025, %v292_v59  }
  0xc3   : > { %v1395_v62 = vpop.permute.xlu1 %497  ;;  %v1397_v63 = vpop.permute.xlu0 %317 }
  0xc4   : > { %vm541_vm14 = vcmp.eq.s32.totalorder %v1395_v62, %v1430_v18  ;;  %vm542_vm15 = vcmp.eq.s32.totalorder %v1395_v62, %v1437_v21 }
  0xc5   : > { %1026 = vset.pattern.permute.xlu1 %v1145_v2 }
  0xc6   : > { %620 = vperm.xlu1 %1026, %v292_v59  }
  0xc7   : > { %v1401_v1 = vpop.permute.xlu0 %407 }
  0xc8   : > { %v1404_v6 = vpop.permute.xlu1 %392 }
  0xc9   : > { %v461_v40 = vsel %vm349_vm10, %v1404_v6, 0.0  ;;  %v462_v41 = vsel %vm350_vm11, %v1404_v6, 0.0  ;;  %vm357_vm10 = vcmp.eq.s32.totalorder %v1397_v63, %v1430_v18  ;;  %vm358_vm11 = vcmp.eq.s32.totalorder %v1397_v63, %v1437_v21 }
  0xca   : > { %1027 = vset.pattern.permute.xlu1 %v1146_v3 }
  0xcb   : > { %338 = vperm.xlu1 %1027, %v277_v5   ;;  %v1407_v7 = vpop.permute.xlu0 %323 }
  0xcd   : > { %v581_v8 = vpop.permute.xlu1 %580 }
  0xce   : > { %v637_v36 = vsel %vm541_vm14, %v581_v8, 0.0  ;;  %v638_v37 = vsel %vm542_vm15, %v581_v8, 0.0 }
  0xcf   : > { %1028 = vset.pattern.permute.xlu1 %v1145_v2  ;;  %v1410_v9 = vpop.permute.xlu0 %417  ;;  %v669_v46 = vadd.f32 %v637_v36, %v461_v40  ;;  %v670_v47 = vadd.f32 %v638_v37, %v462_v41 }
  0xd0   : > { %530 = vperm.xlu1 %1028, %v277_v5  }
  0xd2   : > { %v1412_v10 = vpop.permute.xlu1 %308 }
  0xd3   : > { %v1414_v11 = vpop.permute.xlu0 %329  ;;  %vm351_vm2 = vcmp.eq.s32.totalorder %v1412_v10, %v1430_v18  ;;  %vm352_vm3 = vcmp.eq.s32.totalorder %v1412_v10, %v1437_v21 }
  0xd4   : > { %533 = vperm.xlu1 %1028, %v1335_v35   ;;  %v463_v52 = vsel %vm351_vm2, %v1392_v61, 0.0  ;;  %v464_v53 = vsel %vm352_vm3, %v1392_v61, 0.0 }
  0xd7   : > { %v1418_v12 = vpop.permute.xlu1 %500  ;;  %v1420_v13 = vpop.permute.xlu0 %427 }
  0xd8   : > { %1030 = vset.pattern.permute.xlu1 %v1146_v3 }
  0xd9   : > { %452 = vperm.xlu1 %1030, %v294_v4  }
  0xdb   : > { %v1423_v14 = vpop.permute.xlu1 %503  ;;  %v1425_v15 = vpop.permute.xlu0 %335 }
  0xdc   : > { %vm545_vm4 = vcmp.eq.s32.totalorder %v1423_v14, %v1430_v18  ;;  %vm546_vm5 = vcmp.eq.s32.totalorder %v1423_v14, %v1437_v21 }
  0xdd   : > { %1031 = vset.pattern.permute.xlu1 %v1145_v2 }
  0xde   : > { %628 = vperm.xlu1 %1031, %v294_v4  }
  0xdf   : > { %v1428_v17 = vpop.permute.xlu0 %437 }
  0xe0   : > { %v1432_v19 = vpop.permute.xlu1 %402 }
  0xe1   : > { %v465_v62 = vsel %vm353_vm12, %v1432_v19, 0.0  ;;  %v466_v61 = vsel %vm354_vm13, %v1432_v19, 0.0 }
  0xe3   : > { %v1434_v20 = vpop.permute.xlu0 %341 }
  0xe5   : > { %v589_v3 = vpop.permute.xlu1 %588 }
  0xe6   : > { %v641_v54 = vsel %vm545_vm4, %v589_v3, 0.0  ;;  %v642_v55 = vsel %vm546_vm5, %v589_v3, 0.0  ;;  %vm361_vm4 = vcmp.eq.s32.totalorder %v1407_v7, %v1430_v18  ;;  %vm362_vm5 = vcmp.eq.s32.totalorder %v1407_v7, %v1437_v21 }
  0xe7   : > { %v1451_v2 = vpop.permute.xlu0 %447  ;;  %v673_v6 = vadd.f32 %v641_v54, %v465_v62  ;;  %v674_v8 = vadd.f32 %v642_v55, %v466_v61 }
  0xea   : > { %v1465_v28 = vpop.permute.xlu1 %314 }
  0xeb   : > { %vm355_vm8 = vcmp.eq.s32.totalorder %v1465_v28, %v1430_v18  ;;  %vm356_vm9 = vcmp.eq.s32.totalorder %v1465_v28, %v1437_v21 }
  0xec   : > { %v569_v33 = vpop.permute.xlu0 %568  ;;  %v467_v22 = vsel %vm355_vm8, %v1401_v1, 0.0  ;;  %v468_v23 = vsel %vm356_vm9, %v1401_v1, 0.0 }
  0xed   : > { %v631_v34 = vsel %vm535_vm6, %v569_v33, 0.0  ;;  %v632_v35 = vsel %vm536_vm7, %v569_v33, 0.0  ;;  %vm543_vm6 = vcmp.eq.s32.totalorder %v1418_v12, %v1430_v18  ;;  %vm544_vm7 = vcmp.eq.s32.totalorder %v1418_v12, %v1437_v21 }
  0xee   : > { %v663_v38 = vadd.f32 %v631_v34, %v455_v26  ;;  %v664_v39 = vadd.f32 %v632_v35, %v456_v27 }
  0xef   : > { %v507_v42 = vpop.permute.xlu1 %506 }
  0xf0   : > { %v577_v43 = vpop.permute.xlu0 %576  ;;  %v696_v44 = vpack.c.bf16 %v666_v30, %v664_v39  ;;  %v695_v45 = vpack.c.bf16 %v665_v29, %v663_v38  ;;  %vm547_vm12 = vcmp.eq.s32.totalorder %v507_v42, %v1430_v18  ;;  %vm548_vm13 = vcmp.eq.s32.totalorder %v507_v42, %v1437_v21 }
  0xf1   : > { %v635_v48 = vsel %vm539_vm0, %v577_v43, 0.0  ;;  %v636_v49 = vsel %vm540_vm1, %v577_v43, 0.0 }
  0xf2   : > { %v667_v50 = vadd.f32 %v635_v48, %v459_v31  ;;  %v668_v51 = vadd.f32 %v636_v49, %v460_v32  ;;  %719 = vmatprep.subr.bf16.mxu0 %v696_v44 }
  0xf3   : > { %v510_v56 = vpop.permute.xlu1 %509  ;;  %720 = vmatpush1.bf16.msra.mxu0 %v695_v45 }
  0xf4   : > { %v585_v57 = vpop.permute.xlu0 %584  ;;  %v698_v59 = vpack.c.bf16 %v670_v47, %v668_v51  ;;  %v697_v60 = vpack.c.bf16 %v669_v46, %v667_v50  ;;  %vm549_vm14 = vcmp.eq.s32.totalorder %v510_v56, %v1430_v18  ;;  %vm550_vm15 = vcmp.eq.s32.totalorder %v510_v56, %v1437_v21 }
  0xf5   : > { %v639_v0 = vsel %vm543_vm6, %v585_v57, 0.0  ;;  %v640_v5 = vsel %vm544_vm7, %v585_v57, 0.0 }
  0xf6   : > { %v671_v10 = vadd.f32 %v639_v0, %v463_v52  ;;  %v672_v4 = vadd.f32 %v640_v5, %v464_v53  ;;  %721 = vmatprep.subr.bf16.mxu0 %v698_v59 }
  0xf7   : > { %722 = vmatpush1.bf16.msra.mxu0 %v697_v60 }
  0xf8   : > { %v413_v12 = vpop.permute.xlu1 %412  ;;  %v700_v14 = vpack.c.bf16 %v674_v8, %v672_v4  ;;  %v699_v16 = vpack.c.bf16 %v673_v6, %v671_v10  ;;  %v593_v3 = vpop.permute.xlu0 %592 }
  0xf9   : > { %v643_v58 = vsel %vm547_vm12, %v593_v3, 0.0  ;;  %v644_v19 = vsel %vm548_vm13, %v593_v3, 0.0  ;;  %v469_v25 = vsel %vm357_vm10, %v413_v12, 0.0  ;;  %v470_v26 = vsel %vm358_vm11, %v413_v12, 0.0 }
  0xfa   : > { %723 = vmatprep.subr.bf16.mxu0 %v700_v14  ;;  %v675_v28 = vadd.f32 %v643_v58, %v467_v22  ;;  %v676_v29 = vadd.f32 %v644_v19, %v468_v23  ;;  %vm365_vm12 = vcmp.eq.s32.totalorder %v1414_v11, %v1430_v18  ;;  %vm366_vm13 = vcmp.eq.s32.totalorder %v1414_v11, %v1437_v21 }
  0xfb   : > { %724 = vmatpush1.bf16.msra.mxu0 %v699_v16 }
  0xfc   : > { %v601_v37 = vpop.permute.xlu0 %600 }
  0xfd   : > { %v597_v24 = vpop.permute.xlu1 %596 }
  0xfe   : > { %v645_v27 = vsel %vm549_vm14, %v597_v24, 0.0  ;;  %v646_v63 = vsel %vm550_vm15, %v597_v24, 0.0 }
  0xff   : > { %v677_v30 = vadd.f32 %v645_v27, %v469_v25  ;;  %v678_v31 = vadd.f32 %v646_v63, %v470_v26 }
 0x100   : > { %v609_v55 = vpop.permute.xlu0 %608 }
 0x101   : > { %v702_v32 = vpack.c.bf16 %v678_v31, %v676_v29  ;;  %v701_v33 = vpack.c.bf16 %v677_v30, %v675_v28 }
 0x102   : > { %v321_v34 = vpop.permute.xlu1 %320 }
 0x103   : > { %725 = vmatprep.subr.bf16.mxu0 %v702_v32  ;;  %vm359_vm2 = vcmp.eq.s32.totalorder %v321_v34, %v1430_v18  ;;  %vm360_vm3 = vcmp.eq.s32.totalorder %v321_v34, %v1437_v21 }
 0x104   : > { %726 = vmatpush1.bf16.msra.mxu0 %v701_v33  ;;  %v471_v40 = vsel %vm359_vm2, %v1410_v9, 0.0  ;;  %v472_v41 = vsel %vm360_vm3, %v1410_v9, 0.0  ;;  %v617_v19 = vpop.permute.xlu0 %616 }
 0x107   : > { %v513_v35 = vpop.permute.xlu1 %512 }
 0x108   : > { %vm551_vm0 = vcmp.eq.s32.totalorder %v513_v35, %v1430_v18  ;;  %vm552_vm1 = vcmp.eq.s32.totalorder %v513_v35, %v1437_v21 }
 0x109   : > { %v647_v38 = vsel %vm551_vm0, %v601_v37, 0.0  ;;  %v648_v39 = vsel %vm552_vm1, %v601_v37, 0.0  ;;  %v625_v37 = vpop.permute.xlu0 %624 }
 0x10a   : > { %v679_v47 = vadd.f32 %v647_v38, %v471_v40  ;;  %v680_v48 = vadd.f32 %v648_v39, %v472_v41 }
 0x10b   : > { %v516_v1 = vpop.permute.xlu1 %515 }
 0x10c   : > { %vm553_vm6 = vcmp.eq.s32.totalorder %v516_v1, %v1430_v18  ;;  %vm554_vm7 = vcmp.eq.s32.totalorder %v516_v1, %v1437_v21 }
 0x110   : > { %v423_v36 = vpop.permute.xlu1 %422 }
 0x111   : > { %v473_v43 = vsel %vm361_vm4, %v423_v36, 0.0  ;;  %v474_v44 = vsel %vm362_vm5, %v423_v36, 0.0  ;;  %vm369_vm4 = vcmp.eq.s32.totalorder %v1425_v15, %v1430_v18  ;;  %vm370_vm5 = vcmp.eq.s32.totalorder %v1425_v15, %v1437_v21 }
 0x115   : > { %v605_v42 = vpop.permute.xlu1 %604 }
 0x116   : > { %v649_v45 = vsel %vm553_vm6, %v605_v42, 0.0  ;;  %v650_v46 = vsel %vm554_vm7, %v605_v42, 0.0 }
 0x117   : > { %v681_v49 = vadd.f32 %v649_v45, %v473_v43  ;;  %v682_v50 = vadd.f32 %v650_v46, %v474_v44 }
 0x119   : > { %v704_v7 = vpack.c.bf16 %v682_v50, %v680_v48  ;;  %v703_v51 = vpack.c.bf16 %v681_v49, %v679_v47 }
 0x11a   : > { %v327_v52 = vpop.permute.xlu1 %326 }
 0x11b   : > { %727 = vmatprep.subr.bf16.mxu0 %v704_v7  ;;  %vm363_vm10 = vcmp.eq.s32.totalorder %v327_v52, %v1430_v18  ;;  %vm364_vm11 = vcmp.eq.s32.totalorder %v327_v52, %v1437_v21  ;;  %v718_v7 = vld [vmem:[%s1274_s20 + $0x8] sm:$0xff] }
 0x11c   : > { %728 = vmatpush1.bf16.msra.mxu0 %v703_v51  ;;  %v475_v59 = vsel %vm363_vm10, %v1420_v13, 0.0  ;;  %v476_v60 = vsel %vm364_vm11, %v1420_v13, 0.0 }
 0x11f   : > { %v519_v53 = vpop.permute.xlu1 %518 }
 0x120   : > { %vm555_vm8 = vcmp.eq.s32.totalorder %v519_v53, %v1430_v18  ;;  %vm556_vm9 = vcmp.eq.s32.totalorder %v519_v53, %v1437_v21 }
 0x121   : > { %v651_v56 = vsel %vm555_vm8, %v609_v55, 0.0  ;;  %v652_v57 = vsel %vm556_vm9, %v609_v55, 0.0 }
 0x122   : > { %v683_v8 = vadd.f32 %v651_v56, %v475_v59  ;;  %v684_v10 = vadd.f32 %v652_v57, %v476_v60 }
 0x123   : > { %v522_v9 = vpop.permute.xlu1 %521 }
 0x124   : > { %vm557_vm14 = vcmp.eq.s32.totalorder %v522_v9, %v1430_v18  ;;  %vm558_vm15 = vcmp.eq.s32.totalorder %v522_v9, %v1437_v21 }
 0x128   : > { %v433_v54 = vpop.permute.xlu1 %432 }
 0x129   : > { %v477_v61 = vsel %vm365_vm12, %v433_v54, 0.0  ;;  %v478_v0 = vsel %vm366_vm13, %v433_v54, 0.0  ;;  %vm373_vm12 = vcmp.eq.s32.totalorder %v1434_v20, %v1430_v18  ;;  %vm374_vm13 = vcmp.eq.s32.totalorder %v1434_v20, %v1437_v21 }
 0x12d   : > { %v613_v62 = vpop.permute.xlu1 %612 }
 0x12e   : > { %v653_v5 = vsel %vm557_vm14, %v613_v62, 0.0  ;;  %v654_v6 = vsel %vm558_vm15, %v613_v62, 0.0 }
 0x12f   : > { %v685_v4 = vadd.f32 %v653_v5, %v477_v61  ;;  %v686_v12 = vadd.f32 %v654_v6, %v478_v0 }
 0x131   : > { %v706_v11 = vpack.c.bf16 %v686_v12, %v684_v10  ;;  %v705_v14 = vpack.c.bf16 %v685_v4, %v683_v8 }
 0x132   : > { %v333_v16 = vpop.permute.xlu1 %332 }
 0x133   : > { %729 = vmatprep.subr.bf16.mxu0 %v706_v11  ;;  %vm367_vm2 = vcmp.eq.s32.totalorder %v333_v16, %v1430_v18  ;;  %vm368_vm3 = vcmp.eq.s32.totalorder %v333_v16, %v1437_v21 }
 0x134   : > { %730 = vmatpush1.bf16.msra.mxu0 %v705_v14  ;;  %v479_v24 = vsel %vm367_vm2, %v1428_v17, 0.0  ;;  %v480_v25 = vsel %vm368_vm3, %v1428_v17, 0.0 }
 0x137   : > { %v525_v3 = vpop.permute.xlu1 %524 }
 0x138   : > { %vm559_vm0 = vcmp.eq.s32.totalorder %v525_v3, %v1430_v18  ;;  %vm560_vm1 = vcmp.eq.s32.totalorder %v525_v3, %v1437_v21 }
 0x139   : > { %v655_v22 = vsel %vm559_vm0, %v617_v19, 0.0  ;;  %v656_v23 = vsel %vm560_vm1, %v617_v19, 0.0 }
 0x13a   : > { %v687_v30 = vadd.f32 %v655_v22, %v479_v24  ;;  %v688_v31 = vadd.f32 %v656_v23, %v480_v25 }
 0x13b   : > { %v528_v13 = vpop.permute.xlu1 %527 }
 0x13c   : > { %vm561_vm6 = vcmp.eq.s32.totalorder %v528_v13, %v1430_v18  ;;  %vm562_vm7 = vcmp.eq.s32.totalorder %v528_v13, %v1437_v21 }
 0x140   : > { %v443_v58 = vpop.permute.xlu1 %442 }
 0x141   : > { %v481_v27 = vsel %vm369_vm4, %v443_v58, 0.0  ;;  %v482_v63 = vsel %vm370_vm5, %v443_v58, 0.0 }
 0x145   : > { %v621_v26 = vpop.permute.xlu1 %620 }
 0x146   : > { %v657_v28 = vsel %vm561_vm6, %v621_v26, 0.0  ;;  %v658_v29 = vsel %vm562_vm7, %v621_v26, 0.0 }
 0x147   : > { %v689_v32 = vadd.f32 %v657_v28, %v481_v27  ;;  %v690_v15 = vadd.f32 %v658_v29, %v482_v63 }
 0x149   : > { %v708_v33 = vpack.c.bf16 %v690_v15, %v688_v31  ;;  %v707_v34 = vpack.c.bf16 %v689_v32, %v687_v30 }
 0x14a   : > { %v339_v35 = vpop.permute.xlu1 %338 }
 0x14b   : > { %731 = vmatprep.subr.bf16.mxu0 %v708_v33  ;;  %vm371_vm10 = vcmp.eq.s32.totalorder %v339_v35, %v1430_v18  ;;  %vm372_vm11 = vcmp.eq.s32.totalorder %v339_v35, %v1437_v21 }
 0x14c   : > { %732 = vmatpush1.bf16.msra.mxu0 %v707_v34  ;;  %v483_v40 = vsel %vm371_vm10, %v1451_v2, 0.0  ;;  %v484_v41 = vsel %vm372_vm11, %v1451_v2, 0.0 }
 0x14f   : > { %v531_v17 = vpop.permute.xlu1 %530 }
 0x150   : > { %vm563_vm8 = vcmp.eq.s32.totalorder %v531_v17, %v1430_v18  ;;  %vm564_vm9 = vcmp.eq.s32.totalorder %v531_v17, %v1437_v21 }
 0x151   : > { %v659_v38 = vsel %vm563_vm8, %v625_v37, 0.0  ;;  %v660_v39 = vsel %vm564_vm9, %v625_v37, 0.0 }
 0x152   : > { %v691_v20 = vadd.f32 %v659_v38, %v483_v40  ;;  %v692_v47 = vadd.f32 %v660_v39, %v484_v41 }
 0x153   : > { %v534_v1 = vpop.permute.xlu1 %533 }
 0x154   : > { %vm565_vm14 = vcmp.eq.s32.totalorder %v534_v1, %v1430_v18  ;;  %vm566_vm15 = vcmp.eq.s32.totalorder %v534_v1, %v1437_v21  ;;  %v716_v18 = vld [vmem:[%s715_s26] sm:$0xf] }
 0x155   : > { %v717_v21 = vld [vmem:[%s1274_s20] sm:$0xff] }
 0x158   : > { %v453_v36 = vpop.permute.xlu1 %452 }
 0x159   : > { %v485_v43 = vsel %vm373_vm12, %v453_v36, 0.0  ;;  %v486_v44 = vsel %vm374_vm13, %v453_v36, 0.0 }
 0x15d   : > { %v629_v42 = vpop.permute.xlu1 %628 }
 0x15e   : > { %v661_v45 = vsel %vm565_vm14, %v629_v42, 0.0  ;;  %v662_v46 = vsel %vm566_vm15, %v629_v42, 0.0 }
 0x15f   : > { %v693_v48 = vadd.f32 %v661_v45, %v485_v43  ;;  %v694_v49 = vadd.f32 %v662_v46, %v486_v44 }
 0x161   : > { %v709_v2 = vpack.c.bf16 %v693_v48, %v691_v20  ;;  %v710_v50 = vpack.c.bf16 %v694_v49, %v692_v47 }
 0x163   : > { %733 = vmatprep.subr.bf16.mxu0 %v710_v50 }
 0x164   : > { %734 = vmatpush1.bf16.msra.mxu0 %v709_v2 }
 0x167   : > { %752 = vmatmul.mubr.bf16.vlgmr.msra.gmra.mrb[0].mxu0 %v716_v18 }
 0x23a   : > { %v753_v51 = vpop.f32.mrb[0].mxu0 }
 0x23b   : > { %v760_v52 = vadd.f32 %v753_v51, %v717_v21  ;;  %v755_v53 = vpop.f32.mrb[1].mxu0 }
 0x23c   : > { %v761_v9 = vadd.f32 %v755_v53, %v718_v7  ;;  %v757_v54 = vpop.f32.mrb[2].mxu0 }
 0x23d   : > { %762 = vst [vmem:[%s1274_s20] sm:$0xff] %v760_v52  ;;  %v758_v55 = vpop.f32.mrb[3].mxu0 }
 0x23e   : > { %763 = vst [vmem:[%s1274_s20 + $0x8] sm:$0xff] %v761_v9 }
 0x23f   : > { %1045 = shalt.err (!%p1042_p10)
}
 0x240   : > { %s1046_s20 = scalar_lea.hbm %s1593_s30, 256  ;;  %s1050_s26 = scalar_lea.hbm %s1659_s3, 1024 }
 0x241   : > { %p1047_p11 = scmp.ne.s32.totalorder %s1593_s30, %s1046_s20  ;;  %p1051_p0 = scmp.lt.u32.totalorder %s1593_s30, %s1659_s3 }
 0x242   : > { %p1052_p1 = scmp.lt.u32.totalorder %s1050_s26, %s1046_s20  ;;  %p1054_p3 = scmp.lt.u32.totalorder %s1046_s20, %s1593_s30 }
 0x243   : > { %p1048_p12 = pnand %p1047_p11, %p1230_p6 }
 0x244   : > { %p1053_p2 = por %p1052_p1, %p1051_p0 }
 0x245   : > { %p1049_p13 = pneg %p1048_p12 }
 0x246   : > { %p1055_p4 = por %p1054_p3, %p1053_p2 }
 0x248   : > { %p1056_p5 = pnand %p1055_p4, %p1049_p13 }
 0x24a   : > { %1059 = shalt.err (!%p1056_p5)
}
 0x24b   : > { %909 = dma.vmem_to_hbm [thread:$0]  (%p1230_p6), %s1595_s22, 256, %s1593_s30, %s765_s17  }
 0x24c PF: > { %p915_p8 = scmp.ge.s32.totalorder %s1142_s21, 2  ;;  %s793_s10 = sand.u32 1, %s1106_s12  }
 0x24d   : > { %s794_s11 = scalar_lea.sflag [#allocation3], %s793_s10 }
 0x24e   : > { %p912_p9 = pnand %p915_p8, %p1237_p7 }
 0x250   : > { %1101 = dma.done.wait (!%p912_p9), %s794_s11, 256  }
 0x251   : > { %1103 = vsyncadd (!%p912_p9), %s794_s11, 4294967040  ;;  %s16_s21 = sadd.s32 1, %s1142_s21   ;;  %s1671_s17 = sld [smem:[#allocation5_spill]] }
 0x252   : > { %p13_p10 = scmp.ge.s32.totalorder %s16_s21, 10   ;;  %s1672_s27 = sld [smem:[#allocation6_spill]] }
 0x253   : > { %s1673_s22 = sld [smem:[#allocation7_spill]]  ;;  %s1674_s20 = sld [smem:[#allocation8_spill]] }
 0x254   : > { %s1675_s12 = smov %s1110_s13  ;;  %s1676_s13 = smov %s1114_s14 }
 0x255   : > { %s1677_s14 = smov %s1251_s6  ;;  %s1678_s15 = smov %s1130_s18 }
 0x256   : > { %s1679_s16 = smov %s1134_s19  ;;  %15 = sbr.rel (!%p13_p10) target bundleno = 6 (0x6), region = 78 }
 0x258   : > { %s1680_s18 = smov %s1672_s27 }
 0x259   : > { %s1681_s19 = smov %s1673_s22 }
 0x25d   :  { %799 = vsyncpa [#allocation3], 1 }
 0x25e   :  { %801 = vsyncpa [#allocation3 + $0x1], 1 }

</bundles_post_ra>
